<compile_context>
chip_gen: v7x
topology: tpu7x:2x2x1
jax: 0.10.0
libtpu: 0.0.40
codegen_flags: <defaults>
</compile_context>

<pallas_src>
import jax
import jax.numpy as jnp
from jax.experimental import pallas as pl
from jax.experimental.pallas import tpu as pltpu


def _fused_heads_kernel(hid_ref, w_ref, b_ref, out_ref):
    # hid_ref: (1, TS, H)   w_ref: (H, LPAD)   b_ref: (1, LPAD)   out_ref: (1, TS, LPAD)
    h = hid_ref[0]                                                     # (TS, H)
    acc = jnp.dot(h, w_ref[...], preferred_element_type=jnp.float32)   # (TS, LPAD) f32 acc
    acc = acc + b_ref[...].astype(jnp.float32)                         # (1, LPAD) broadcasts
    out_ref[0] = acc.astype(out_ref.dtype)


def _choose_seq_tile(S, H, itemsize, budget_bytes=8 * 1024 * 1024):
    """Largest multiple-of-8 divisor of S whose (TS, H) hidden tile fits ~budget_bytes."""
    max_rows = max(8, budget_bytes // max(1, H * itemsize))
    max_rows = min(max_rows, 1024, S)
    if S <= max_rows:
        return S
    start = max_rows - (max_rows % 8)
    for ts in range(start, 7, -8):
        if S % ts == 0:
            return ts
    return S  # fallback: single tile; "equals full dim" satisfies the (8,128) rule


def token_and_seq_heads(hidden, last_idx, w_tok, b_tok, w_seq):
    """hidden: [B,S,H]; last_idx: [B] int32; w_tok: [H,T]; b_tok: [1,T]; w_seq: [H,L]."""
    B, S, H = hidden.shape
    T = w_tok.shape[1]
    L = w_seq.shape[1]
    itemsize = jnp.dtype(hidden.dtype).itemsize

    # ---- fuse + lane-pad the two heads: columns [0:T] token head, [T:T+L] seq head ----
    LPAD = ((T + L + 127) // 128) * 128
    w_fused = jnp.zeros((H, LPAD), dtype=hidden.dtype)
    w_fused = w_fused.at[:, :T].set(w_tok.astype(hidden.dtype))
    w_fused = w_fused.at[:, T:T + L].set(w_seq.astype(hidden.dtype))
    b_fused = jnp.zeros((1, LPAD), dtype=hidden.dtype)
    b_fused = b_fused.at[:, :T].set(b_tok.astype(hidden.dtype))        # seq head has no bias

    # ---- sequence tiling (generation-aware VMEM budget) ----
    TS = _choose_seq_tile(S, H, itemsize)
    grid = (B, S // TS)

    # Raise scoped VMEM only if the double-buffered working set needs it (cap for v7x).
    vmem_need = 2 * (TS * H + TS * LPAD) * itemsize + 2 * (H * LPAD + LPAD) * itemsize
    cp_kwargs = {}
    if vmem_need > 24 * 1024 * 1024:
        cp_kwargs["vmem_limit_bytes"] = int(min(vmem_need * 5 // 4, 60 * 1024 * 1024))

    cost = pl.CostEstimate(
        flops=2 * B * S * H * LPAD,
        transcendentals=0,
        bytes_accessed=(B * S * H + B * S * LPAD + H * LPAD + LPAD) * itemsize,
    )

    out_padded = pl.pallas_call(
        _fused_heads_kernel,
        out_shape=jax.ShapeDtypeStruct((B, S, LPAD), hidden.dtype),
        grid_spec=pltpu.PrefetchScalarGridSpec(
            num_scalar_prefetch=0,
            grid=grid,
            in_specs=[
                pl.BlockSpec((1, TS, H), lambda b, s: (b, s, 0)),   # streamed hidden tile
                pl.BlockSpec((H, LPAD), lambda b, s: (0, 0)),       # fused head weight (constant)
                pl.BlockSpec((1, LPAD), lambda b, s: (0, 0)),       # fused head bias (constant)
            ],
            out_specs=pl.BlockSpec((1, TS, LPAD), lambda b, s: (b, s, 0)),
        ),
        compiler_params=pltpu.CompilerParams(
            dimension_semantics=("parallel", "parallel"), **cp_kwargs),
        cost_estimate=cost,
    )(hidden, w_fused, b_fused)

    tok_logits = out_padded[:, :, :T]
    # seq head is linear w/o bias, so pooling-after-matmul == matmul-after-pooling
    seq_logits = out_padded[jnp.arange(B), last_idx, T:T + L]
    return tok_logits, seq_logits


def forward(params, input_ids, attention_mask, pad_token_id):
    """Mirrors TokenLogitsToSequenceModel.forward -> {'token_logits', 'seq_logits'}."""
    # TODO(synk): the pretrained Qwen2/Phi3 backbone (+ LoRA/PEFT) has no Pallas
    # equivalent here; the hidden_state it would produce is replaced by a
    # deterministic synthetic embedding lookup (glue, plain JAX).
    hidden = params["embedding"][input_ids].astype(jnp.bfloat16)          # (B, S, H)

    # ModelHandler.process_seq_logits: last non-pad token index per row.
    non_pad = (input_ids != pad_token_id).astype(jnp.int32)
    token_indices = jnp.arange(input_ids.shape[-1], dtype=jnp.int32)
    last_idx = jnp.argmax(token_indices * non_pad, axis=-1).astype(jnp.int32)

    tok_logits, seq_logits = token_and_seq_heads(
        hidden, last_idx, params["w_tok"], params["b_tok"], params["w_seq"])
    return {"token_logits": tok_logits, "seq_logits": seq_logits}


if __name__ == "__main__":
    B, S, H = 2, 8, 32
    VOCAB = 16
    NUM_TOK_LABELS = 3
    NUM_SEQ_LABELS = 2
    PAD_TOKEN_ID = 0

    key = jax.random.PRNGKey(0)
    k_emb, k_wt, k_bt, k_ws, k_ids = jax.random.split(key, 5)

    params = {
        "embedding": (0.02 * jax.random.normal(k_emb, (VOCAB, H), jnp.float32)).astype(jnp.bfloat16),
        # stored transposed relative to torch nn.Linear ([out,in] -> [in,out])
        "w_tok": (0.05 * jax.random.normal(k_wt, (H, NUM_TOK_LABELS), jnp.float32)).astype(jnp.bfloat16),
        "b_tok": (0.05 * jax.random.normal(k_bt, (1, NUM_TOK_LABELS), jnp.float32)).astype(jnp.bfloat16),
        "w_seq": (0.05 * jax.random.normal(k_ws, (H, NUM_SEQ_LABELS), jnp.float32)).astype(jnp.bfloat16),
    }

    # input_ids with some trailing padding on row 1
    input_ids = jax.random.randint(k_ids, (B, S), 1, VOCAB, dtype=jnp.int32)
    input_ids = input_ids.at[1, 5:].set(PAD_TOKEN_ID)
    attention_mask = (input_ids != PAD_TOKEN_ID).astype(jnp.int32)

    out = forward(params, input_ids, attention_mask, PAD_TOKEN_ID)
    out = jax.block_until_ready(out)

    # ---- pure-JAX reference check ----
    hidden = params["embedding"][input_ids].astype(jnp.float32)
    non_pad = (input_ids != PAD_TOKEN_ID).astype(jnp.int32)
    last_idx = jnp.argmax(jnp.arange(S, dtype=jnp.int32) * non_pad, axis=-1)
    tok_ref = hidden @ params["w_tok"].astype(jnp.float32) + params["b_tok"].astype(jnp.float32)
    seq_full = hidden @ params["w_seq"].astype(jnp.float32)
    seq_ref = seq_full[jnp.arange(B), last_idx]

    assert out["token_logits"].shape == (B, S, NUM_TOK_LABELS)
    assert out["seq_logits"].shape == (B, NUM_SEQ_LABELS)
    assert jnp.allclose(out["token_logits"].astype(jnp.float32), tok_ref, rtol=2e-2, atol=2e-2)
    assert jnp.allclose(out["seq_logits"].astype(jnp.float32), seq_ref, rtol=2e-2, atol=2e-2)

    print("KERNEL_OK")
</pallas_src>

<mosaic_0001>
module attributes {stable_mosaic.version = 11 : i64} {
  func.func @_fused_heads_kernel(%arg0: i32, %arg1: i32, %arg2: memref<1x8x32xbf16, #tpu.memory_space<vmem>>, %arg3: memref<32x128xbf16, #tpu.memory_space<vmem>>, %arg4: memref<1x128xbf16, #tpu.memory_space<vmem>>, %arg5: memref<1x8x128xbf16, #tpu.memory_space<vmem>>) attributes {dimension_semantics = [#tpu.dimension_semantics<parallel>, #tpu.dimension_semantics<parallel>], iteration_bounds = array<i64: 2, 1>, scalar_prefetch = 0 : i64, scratch_operands = 0 : i64, tpu.core_type = #tpu.core_type<tc>, window_params = [{transform_indices = @transform_0, window_bounds = array<i64: 1, 8, 32>}, {pipeline_mode = #tpu.pipeline_mode<synchronous>, transform_indices = @transform_1, window_bounds = array<i64: 32, 128>}, {pipeline_mode = #tpu.pipeline_mode<synchronous>, transform_indices = @transform_2, window_bounds = array<i64: 1, 128>}, {transform_indices = @transform_3, window_bounds = array<i64: 1, 8, 128>}]} {
    %c0 = arith.constant 0 : index
    %c0_0 = arith.constant 0 : index
    %c0_1 = arith.constant 0 : index
    %0 = vector.load %arg2[%c0, %c0_0, %c0_1] : memref<1x8x32xbf16, #tpu.memory_space<vmem>>, vector<1x8x32xbf16>
    %1 = vector.shape_cast %0 : vector<1x8x32xbf16> to vector<8x32xbf16>
    %c0_2 = arith.constant 0 : index
    %c0_3 = arith.constant 0 : index
    %2 = vector.load %arg3[%c0_2, %c0_3] : memref<32x128xbf16, #tpu.memory_space<vmem>>, vector<32x128xbf16>
    %cst = arith.constant dense<0.000000e+00> : vector<8x128xf32>
    %3 = tpu.matmul %1, %2, %cst {dimension_numbers = #tpu.dot_dimension_numbers<[1], [0], [0], [1], [0, 0, 1, 1], [], []>} : vector<8x32xbf16>, vector<32x128xbf16>, vector<8x128xf32> -> vector<8x128xf32>
    %c0_4 = arith.constant 0 : index
    %c0_5 = arith.constant 0 : index
    %4 = vector.load %arg4[%c0_4, %c0_5] : memref<1x128xbf16, #tpu.memory_space<vmem>>, vector<1x128xbf16>
    %5 = arith.extf %4 : vector<1x128xbf16> to vector<1x128xf32>
    %6 = vector.broadcast %5 : vector<1x128xf32> to vector<8x128xf32>
    %7 = arith.addf %3, %6 : vector<8x128xf32>
    %8 = arith.truncf %7 : vector<8x128xf32> to vector<8x128xbf16>
    %c0_6 = arith.constant 0 : index
    %c0_7 = arith.constant 0 : index
    %c0_8 = arith.constant 0 : index
    %9 = vector.load %arg5[%c0_6, %c0_7, %c0_8] : memref<1x8x128xbf16, #tpu.memory_space<vmem>>, vector<1x8x128xbf16>
    %10 = vector.shape_cast %9 : vector<1x8x128xbf16> to vector<8x128xbf16>
    %11 = vector.shape_cast %8 : vector<8x128xbf16> to vector<1x8x128xbf16>
    tpu.vector_store %arg5[%c0_6, %c0_7, %c0_8], %11 {strides = array<i32>} : memref<1x8x128xbf16, #tpu.memory_space<vmem>>, vector<1x8x128xbf16>,
    return
  }
  func.func @transform_0(%arg0: i32, %arg1: i32) -> (i32, i32, i32) {
    %c0_i32 = arith.constant 0 : i32
    %c0_i32_0 = arith.constant 0 : i32
    return %arg0, %arg1, %c0_i32 : i32, i32, i32
  }
  func.func @transform_1(%arg0: i32, %arg1: i32) -> (i32, i32) {
    %c0_i32 = arith.constant 0 : i32
    %c0_i32_0 = arith.constant 0 : i32
    %c0_i32_1 = arith.constant 0 : i32
    return %c0_i32, %c0_i32_0 : i32, i32
  }
  func.func @transform_2(%arg0: i32, %arg1: i32) -> (i32, i32) {
    %c0_i32 = arith.constant 0 : i32
    %c0_i32_0 = arith.constant 0 : i32
    %c0_i32_1 = arith.constant 0 : i32
    return %c0_i32, %c0_i32_0 : i32, i32
  }
  func.func @transform_3(%arg0: i32, %arg1: i32) -> (i32, i32, i32) {
    %c0_i32 = arith.constant 0 : i32
    %c0_i32_0 = arith.constant 0 : i32
    return %arg0, %arg1, %c0_i32 : i32, i32, i32
  }
}

</mosaic_0001>

<bundles_post_ra>
// kernel: tpu_custom_call.1
= control target key start
LH: loop header
LB: loop body
LE: loop exit
PB: predicated region body
PF: predicated region fallthrough
CT: control target
= control target key end

     0   :  { %8 = vsyncpa [#allocation3], 0  ;;  %s891_s0 = inlined_call_operand.hbm [shape: bf16[2,8,32], index: 0, kind: input, shape index: {}]   ;;  %s892_s1 = inlined_call_operand.hbm [shape: bf16[32,128], index: 1, kind: input, shape index: {}]   ;;  %s893_s2 = inlined_call_operand.vmem [shape: bf16[1,128], index: 2, kind: input, shape index: {}]   ;;  %s894_s3 = inlined_call_operand.hbm [shape: bf16[2,8,128], index: 3, kind: output, shape index: {}]  }
   0x1   :  { %10 = vsyncpa [#allocation3 + $0x1], 0 }
   0x2   :  { %11 = vsyncpa [#allocation6], 0 }
   0x3   :  { %12 = vsyncpa [#allocation4], 0 }
   0x4   :  { %14 = vsyncpa [#allocation4 + $0x1], 0  ;;  %s674_s12 = smov 0   ;;  %s676_s13 = smov 0  }
   0x5   :  { %s678_s14 = smov 0   ;;  %s680_s15 = smov 0  }
   0x6   :  { %s682_s16 = smov 0   ;;  %s684_s17 = smov 0  }
   0x7 LB: > { %s393_s18 = sadd.s32 4294967295, %s645_s17   ;;  %s394_s19 = sadd.s32 4294967294, %s645_s17   ;;  %s645_s17 = sphi %s684_s17, %s20_s17   ;;  %s641_s16 = sphi %s682_s16, %s918_s16   ;;  %s637_s15 = sphi %s680_s15, %s917_s15   ;;  %s633_s14 = sphi %s678_s14, %s916_s14   ;;  %s629_s13 = sphi %s676_s13, %s915_s13   ;;  %s625_s12 = sphi %s674_s12, %s914_s12  }
   0x8   : > { %p54_p0 = scmp.ne.s32.totalorder %s629_s13, %s625_s12  ;;  %p708_p1 = scmp.eq.s32.totalorder %s393_s18, 0 }
   0x9   : > { %p712_p2 = scmp.eq.s32.totalorder %s393_s18, 1  ;;  %p128_p3 = scmp.eq.s32.totalorder %s394_s19, 1 }
   0xa   : > { %s899_s20 = scalar_select %p708_p1, 1, 0 }
   0xb   : > { %s900_s21 = scalar_select %p712_p2, 1, 0 }
   0xc   : > { %p718_p4 = por %p708_p1, %p54_p0  ;;  %p395_p5 = scmp.ge.s32.totalorder %s645_s17, 1 }
   0xd   : > { %p723_p6 = por %p128_p3, %p54_p0  ;;  %p135_p7 = scmp.lt.s32.totalorder %s645_s17, 3 }
   0xe   : > { %s901_s22 = scalar_select %p718_p4, 1, 0 }
   0xf   : > { %s902_s23 = scalar_select %p723_p6, 1, 0 }
  0x10   : > { %p728_p8 = pnand %p395_p5, %p135_p7  ;;  %s647_s25 = smov [#allocation5]  }
  0x11   : > { %s147_s26 = sshll.u32 %s647_s25, 4  ;;  %s32_s28 = sadd.s32 1, %s641_s16  ;;  %s148_s26 = int_to_ptr.vmem [resolvable:$true] %s147_s26 }
  0x12   : > { %s903_s24 = scalar_select %p728_p8, 1, 0 }
  0x13   : > { %p430_p9 = pneg %p728_p8  ;;  %s501_s4 = scalar_lea.hbm %s892_s1, 256 }
  0x14   : > { %p502_p12 = scmp.ne.s32.totalorder %s892_s1, %s501_s4  ;;  %p508_p5 = scmp.lt.u32.totalorder %s501_s4, %s892_s1 }
  0x15   : > { %p737_p11 = pnand %p430_p9, %p708_p1 }
  0x17   : > { %p503_p13 = pneg %p737_p11 }
  0x19   : > { %p504_p0 = pnand %p503_p13, %p502_p12 }
  0x1b   : > { %p505_p3 = pneg %p504_p0 }
  0x1d   : > { %p510_p7 = pnand %p508_p5, %p505_p3 }
  0x1f   : > { %513 = shalt.err (!%p510_p7)
}
  0x20   : > { %s514_s9 = scalar_lea.vmem %s148_s26, 256  ;;  %p522_p1 = scmp.lt.s32.totalorder %s148_s26, %s148_s26 }
  0x21   : > { %p515_p9 = scmp.ne.s32.totalorder %s148_s26, %s514_s9  ;;  %p523_p4 = scmp.lt.s32.totalorder %s514_s9, %s514_s9 }
  0x23   : > { %p517_p10 = pnand %p515_p9, %p503_p13  ;;  %p524_p8 = por %p523_p4, %p522_p1 }
  0x25   : > { %p518_p6 = pneg %p517_p10 }
  0x27   : > { %p525_p2 = pnand %p524_p8, %p518_p6 }
  0x29   : > { %528 = shalt.err (!%p525_p2)
}
  0x2a   : > { %s648_s10 = smov 64   ;;  %s649_s11 = smov 4  }
  0x2b   : > { %433 = dma.hbm_to_vmem [thread:$0]  (!%p737_p11), %s892_s1, 256, %s148_s26, [#allocation6], %s648_s10, %s648_s10, %s649_s11  }
  0x2c   : > { %p34_p1 = scmp.ge.s32.totalorder %s32_s28, 2  ;;  %s41_s25 = sadd.s32 1, %s633_s14 }
  0x2d   : > { %p48_p2 = scmp.ne.s32.totalorder %s633_s14, %s629_s13  ;;  %p49_p4 = scmp.eq.s32.totalorder %s645_s17, 0 }
  0x2e   : > { %s920_s28 = smov (%p34_p1, %s32_s28), 0  ;;  %p906_p8 = scmp.ne.s32.totalorder %s900_s21, 0 }
  0x2f   : > { %p764_p6 = por %p49_p4, %p48_p2  ;;  %s36_s27 = ssub.s32 %s641_s16, %s920_s28 }
  0x30   : > { %p770_p10 = por %p906_p8, %p48_p2  ;;  %p443_p12 = scmp.lt.s32.totalorder %s645_s17, 2 }
  0x31   : > { %p39_p11 = scmp.eq.s32.totalorder %s36_s27, 0  ;;  %s164_s26 = sand.u32 1, %s633_s14  }
  0x32   : > { %s398_s4 = sshll.u32 %s164_s26, 2  ;;  %s399_s6 = sshll.u32 %s641_s16, 6 }
  0x33   : > { %s779_s5 = scalar_select %p39_p11, %s633_s14, %s41_s25  }
  0x34   : > { %s785_s9 = scalar_lea.hbm %s891_s0, %s399_s6  ;;  %s168_s21 = scalar_lea.vmem [#allocation2], %s398_s4 }
  0x35   : > { %s176_s10 = sshll.u32 %s168_s21, 4  ;;  %p791_p13 = pnand %p443_p12, %p764_p6  ;;  %s787_s10 = int_to_ptr.vmem [resolvable:$true] %s176_s10 }
  0x36   : > { %s165_s18 = scalar_lea.sflag [#allocation3], %s164_s26  ;;  %s529_s19 = scalar_lea.hbm %s785_s9, 64 }
  0x37   : > { %p530_p0 = scmp.ne.s32.totalorder %s785_s9, %s529_s19  ;;  %p531_p3 = pneg %p791_p13 }
  0x38   : > { %s534_s4 = scalar_lea.hbm %s891_s0, 128  ;;  %p535_p9 = scmp.lt.u32.totalorder %s785_s9, %s891_s0 }
  0x39   : > { %p532_p5 = pnand %p531_p3, %p530_p0  ;;  %p536_p1 = scmp.lt.u32.totalorder %s534_s4, %s529_s19 }
  0x3a   : > { %p538_p4 = scmp.lt.u32.totalorder %s529_s19, %s785_s9 }
  0x3b   : > { %p533_p7 = pneg %p532_p5  ;;  %p537_p2 = por %p536_p1, %p535_p9 }
  0x3d   : > { %p539_p6 = por %p538_p4, %p537_p2 }
  0x3f   : > { %p540_p8 = pnand %p539_p6, %p533_p7 }
  0x41   : > { %543 = shalt.err (!%p540_p8)
}
  0x42   : > { %s544_s26 = scalar_lea.vmem %s787_s10, 64  ;;  %s650_s7 = smov [#allocation2]  }
  0x43   : > { %p545_p12 = scmp.ne.s32.totalorder %s787_s10, %s544_s26  ;;  %s549_s8 = sshll.u32 %s650_s7, 4  ;;  %s550_s8 = int_to_ptr.vmem [resolvable:$false] %s549_s8 }
  0x44   : > { %s551_s21 = scalar_lea.vmem %s550_s8, 128  ;;  %p552_p5 = scmp.lt.s32.totalorder %s787_s10, %s550_s8 }
  0x45   : > { %p547_p11 = pnand %p545_p12, %p531_p3  ;;  %p553_p9 = scmp.lt.s32.totalorder %s551_s21, %s544_s26 }
  0x47   : > { %p548_p0 = pneg %p547_p11  ;;  %p554_p1 = por %p553_p9, %p552_p5 }
  0x49   : > { %p555_p2 = pnand %p554_p1, %p548_p0 }
  0x4b   : > { %558 = shalt.err (!%p555_p2)
}
  0x4c   : > { %437 = dma.hbm_to_vmem [thread:$0]  (!%p791_p13), %s785_s9, 64, %s787_s10, %s165_s18  }
  0x4d   : > { %p909_p7 = scmp.ne.s32.totalorder %s903_s24, 0 }
  0x4e   : > { %s823_s19 = sand.u32 (!%p909_p7), 1, %s629_s13   ;;  %p910_p3 = scmp.ne.s32.totalorder (!%p909_p7), %s901_s22, 0 }
  0x4f   : > { %185 = sbr.rel (%p909_p7) target bundleno = 329 (0x149), region = 32  ;;  %s401_s25 = sshll.u32 (!%p909_p7), %s823_s19, 2 }
  0x50   : > { %s188_s27 = scalar_lea.sflag (!%p909_p7), [#allocation3], %s823_s19  ;;  %s191_s4 = scalar_lea.vmem (!%p909_p7), [#allocation2], %s401_s25 }
  0x56   : > { %612 = dma.done.wait (%p910_p3), %s188_s27, 64  }
  0x57   : > { %614 = vsyncadd (%p910_p3), %s188_s27, 4294967232  ;;  %p911_p4 = scmp.ne.s32.totalorder %s899_s20, 0 }
  0x59   : > { %616 = dma.done.wait (%p911_p4), [#allocation6], 256  }
  0x5a   : > { %618 = vsyncadd (%p911_p4), [#allocation6], 4294967040  ;;  %v651_v0 = vmov 0.0   ;;  %vm652_vm0 = vmmov 0   ;;  %v499_v1 = vld [vmem:[#allocation5] sm:$0xff]   ;;  %v500_v2 = vld [vmem:[#allocation5 + $0x8] sm:$0xff]   ;;  %v226_v4 = vlaneseq }
  0x5b   : > { %414 = vmatprep.subr.bf16.mxu0 %v651_v0  ;;  %418 = vmatprep.mubr.msk.bf16.mxu0 %vm652_vm0, %v651_v0  ;;  %v219_v3 = vld [vmem:[%s191_s4] sm:$0xf]  ;;  %vm242_vm1 = vcmask 261120   ;;  %s408_s20 = sshll.u32 %s637_s15, 6  ;;  %s217_s9 = scalar_lea.vmem [#allocation7], %s401_s25 }
  0x5c   : > { %415 = vmatpush3.bf16.msra.mxu0 %v499_v1  ;;  %v227_v5 = vshrl.u32 %v226_v4, 7  ;;  %v224_v6 = vld [vmem:[%s893_s2] sm:$0x1]  ;;  %s303_s10 = sshll.u32 %s217_s9, 4  ;;  %s842_s29 = scalar_lea.hbm %s894_s3, %s408_s20  ;;  %s844_s10 = int_to_ptr.vmem [resolvable:$true] %s303_s10 }
  0x5d   : > { %416 = vmatprep.subr.bf16.mxu0 %v651_v0  ;;  %v225_v7 = vunpack.c.l.bf16 %v224_v6  ;;  %s289_s6 = scalar_lea.sflag [#allocation4], %s823_s19  ;;  %s559_s15 = scalar_lea.vmem %s844_s10, 64 }
  0x5e   : > { %v228_v8 = vsub.s32 0, %v227_v5  ;;  %p560_p13 = scmp.ne.s32.totalorder %s844_s10, %s559_s15  ;;  %s653_s26 = smov [#allocation7]  }
  0x5f   : > { %s563_s7 = sshll.u32 %s653_s26, 4  ;;  %s564_s7 = int_to_ptr.vmem [resolvable:$false] %s563_s7 }
  0x60   : > { %417 = vmatpush3.bf16.msra.mxu0 %v500_v2  ;;  %v229_v9 = vrot.slane %v225_v7, %v228_v8  ;;  %p561_p6 = pnand %p560_p13, %p770_p10  ;;  %s565_s8 = scalar_lea.vmem %s564_s7, 128 }
  0x61   : > { %p566_p12 = scmp.lt.s32.totalorder %s844_s10, %s564_s7  ;;  %p567_p11 = scmp.lt.s32.totalorder %s565_s8, %s559_s15 }
  0x62   : > { %p562_p8 = pneg %p561_p6 }
  0x63   : > { %419 = vmatmul.mubr.msk.bf16.vlgmr.msra.gmra.mrb[0].mxu0 %vm242_vm1, %v219_v3  ;;  %p568_p0 = por %p567_p11, %p566_p12 }
  0x65   : > { %p569_p5 = pnand %p568_p0, %p562_p8 }
 0x136   : > { %v280_v10 = vpop.f32.mrb[0].mxu0 }
 0x137   : > { %v281_v11 = vadd.f32 %v280_v10, %v229_v9  ;;  %v420_v12 = vpop.f32.mrb[1].mxu0 }
 0x138   : > { %v283_v13 = vpop.f32.mrb[2].mxu0 }
 0x139   : > { %v286_v14 = vpack.c.bf16 %v281_v11, %v281_v11  ;;  %v421_v15 = vpop.f32.mrb[3].mxu0 }
 0x13b   : > { %287 = vst [vmem:[%s217_s9] sm:$0xf] %v286_v14 }
 0x13c   : > { %572 = shalt.err (!%p569_p5)
}
 0x13d   : > { %s573_s21 = scalar_lea.hbm %s842_s29, 64  ;;  %s577_s27 = scalar_lea.hbm %s894_s3, 128 }
 0x13e   : > { %p574_p9 = scmp.ne.s32.totalorder %s842_s29, %s573_s21  ;;  %p578_p7 = scmp.lt.u32.totalorder %s842_s29, %s894_s3 }
 0x13f   : > { %p579_p3 = scmp.lt.u32.totalorder %s577_s27, %s573_s21  ;;  %p581_p13 = scmp.lt.u32.totalorder %s573_s21, %s842_s29 }
 0x140   : > { %p575_p1 = pnand %p574_p9, %p770_p10 }
 0x141   : > { %p580_p4 = por %p579_p3, %p578_p7 }
 0x142   : > { %p576_p2 = pneg %p575_p1 }
 0x143   : > { %p582_p6 = por %p581_p13, %p580_p4 }
 0x145   : > { %p583_p8 = pnand %p582_p6, %p576_p2 }
 0x147   : > { %586 = shalt.err (!%p583_p8)
}
 0x148   : > { %428 = dma.vmem_to_hbm [thread:$0]  (%p770_p10), %s844_s10, 64, %s842_s29, %s289_s6  }
 0x149 PF: > { %s315_s24 = sand.u32 1, %s625_s12   ;;  %p912_p12 = scmp.ne.s32.totalorder %s902_s23, 0 }
 0x14a   : > { %p913_p11 = scmp.ge.s32.totalorder %s645_s17, 2  ;;  %s316_s20 = scalar_lea.sflag [#allocation4], %s315_s24 }
 0x14c   : > { %p439_p0 = pnand %p913_p11, %p912_p12 }
 0x14e   : > { %620 = dma.done.wait (!%p439_p0), %s316_s20, 64  }
 0x14f   : > { %622 = vsyncadd (!%p439_p0), %s316_s20, 4294967232  ;;  %s20_s17 = sadd.s32 1, %s645_s17   ;;  %s914_s12 = smov %s629_s13 }
 0x150   : > { %p17_p5 = scmp.ge.s32.totalorder %s20_s17, 4   ;;  %s915_s13 = smov %s633_s14 }
 0x151   : > { %s916_s14 = smov %s779_s5  ;;  %s917_s15 = smov %s641_s16 }
 0x152   : > { %s918_s16 = smov %s920_s28  ;;  %19 = sbr.rel (!%p17_p5) target bundleno = 7 (0x7), region = 81 }
 0x159   :  { %321 = vsyncpa [#allocation3], 1 }
 0x15a   :  { %323 = vsyncpa [#allocation3 + $0x1], 1 }
 0x15b   :  { %324 = vsyncpa [#allocation6], 1 }
 0x15c   :  { %325 = vsyncpa [#allocation4], 1 }
 0x15d   :  { %327 = vsyncpa [#allocation4 + $0x1], 1 }

</bundles_post_ra>
